<compile_context>
chip_gen: v7x
topology: tpu7x:2x2x1
jax: 0.10.0
libtpu: 0.0.40
codegen_flags: <defaults>
</compile_context>

<pallas_src>
import jax
import jax.numpy as jnp
from jax.experimental import pallas as pl
from jax.experimental.pallas import tpu as pltpu

# ---------------- model hyper-parameters (small, consistent with the module) -
IN = 32          # input feature size
EMBED_SIZE = 16  # hidden / output size of the encoder MLP
Z_DIM = 8        # latent dim (EMBED_SIZE = 2 * Z_DIM, as the forward implies)
DROPOUT = 0.1    # dropout prob (eval mode -> identity)


def _round_up(n, m):
    return ((n + m - 1) // m) * m


def _encoder_kernel(x_ref, w1_ref, b1_ref, w2_ref, b2_ref, params_ref):
    """Fused 2-layer MLP encoder + softplus head on one batch tile."""
    x = x_ref[...]                                              # [TB, IN]
    # Linear 1 + (Dropout = identity in eval) + ReLU
    h = jnp.dot(x, w1_ref[...], preferred_element_type=jnp.float32)
    h = jnp.maximum(h + b1_ref[...], 0.0)                       # [TB, EMBED]
    # Linear 2
    p = jnp.dot(h, w2_ref[...], preferred_element_type=jnp.float32)
    p = p + b2_ref[...]                                         # [TB, EMBED]
    # mu for lanes [0, Z_DIM), softplus+eps for lanes [Z_DIM, EMBED):
    # single full-width select — no sub-lane slices, no concatenate.
    lane = jax.lax.broadcasted_iota(jnp.int32, p.shape, 1)
    params_ref[...] = jnp.where(lane < Z_DIM, p, jax.nn.softplus(p) + 1e-7)


def encoder_forward(x, w1, b1, w2, b2, *, tile_b=1024):
    """x: [B, IN] float32 -> (params [B, EMBED], mu [B, Z], sigma [B, EMBED-Z])."""
    B = x.shape[0]
    TB = min(tile_b, _round_up(B, 8))          # batch tile, multiple of 8 sublanes
    Bp = _round_up(B, TB)                      # padded batch (grid-exact)
    if Bp != B:
        x = jnp.pad(x, ((0, Bp - B), (0, 0)))  # remainder rows zero-padded
    b1r = b1.reshape(1, EMBED_SIZE)
    b2r = b2.reshape(1, EMBED_SIZE)

    grid = (Bp // TB,)
    cost = pl.CostEstimate(
        flops=2 * Bp * (IN * EMBED_SIZE + EMBED_SIZE * EMBED_SIZE),
        transcendentals=Bp * EMBED_SIZE,
        bytes_accessed=(Bp * (IN + EMBED_SIZE)
                        + IN * EMBED_SIZE + EMBED_SIZE * EMBED_SIZE
                        + 2 * EMBED_SIZE) * 4,
    )

    params = pl.pallas_call(
        _encoder_kernel,
        out_shape=jax.ShapeDtypeStruct((Bp, EMBED_SIZE), jnp.float32),
        grid=grid,
        in_specs=[
            pl.BlockSpec((TB, IN), lambda i: (i, 0)),                 # x tile
            pl.BlockSpec((IN, EMBED_SIZE), lambda i: (0, 0)),         # W1 (resident)
            pl.BlockSpec((1, EMBED_SIZE), lambda i: (0, 0)),          # b1 (resident)
            pl.BlockSpec((EMBED_SIZE, EMBED_SIZE), lambda i: (0, 0)), # W2 (resident)
            pl.BlockSpec((1, EMBED_SIZE), lambda i: (0, 0)),          # b2 (resident)
        ],
        out_specs=pl.BlockSpec((TB, EMBED_SIZE), lambda i: (i, 0)),
        compiler_params=pltpu.CompilerParams(
            dimension_semantics=("parallel",)),
        cost_estimate=cost,
    )(x, w1, b1r, w2, b2r)

    params = params[:B]                 # drop padded rows
    mu = params[:, :Z_DIM]              # free XLA slices (no extra kernel output)
    sigma = params[:, Z_DIM:]
    return params, mu, sigma


def _reference(x, w1, b1, w2, b2):
    h = jnp.maximum(x @ w1 + b1, 0.0)
    p = h @ w2 + b2
    mu = p[:, :Z_DIM]
    sigma = jax.nn.softplus(p[:, Z_DIM:]) + 1e-7
    return jnp.concatenate([mu, sigma], axis=1), mu, sigma


if __name__ == "__main__":
    key = jax.random.PRNGKey(0)
    kx, k1, k2, k3, k4, kx2 = jax.random.split(key, 6)

    # Deterministic parameter init (synthetic; mirrors nn.Linear shapes).
    w1 = jax.random.normal(k1, (IN, EMBED_SIZE), dtype=jnp.float32) * 0.1
    b1 = jax.random.normal(k2, (EMBED_SIZE,), dtype=jnp.float32) * 0.1
    w2 = jax.random.normal(k3, (EMBED_SIZE, EMBED_SIZE), dtype=jnp.float32) * 0.1
    b2 = jax.random.normal(k4, (EMBED_SIZE,), dtype=jnp.float32) * 0.1

    # --- small batch (single grid step, padded 4 -> 8 rows) -----------------
    B = 4
    x = jax.random.normal(kx, (B, IN), dtype=jnp.float32)
    params, mu, sigma = jax.block_until_ready(encoder_forward(x, w1, b1, w2, b2))
    p_ref, mu_ref, s_ref = _reference(x, w1, b1, w2, b2)
    assert params.shape == (B, EMBED_SIZE)
    assert jnp.allclose(params, p_ref, atol=1e-5, rtol=1e-5)
    assert jnp.allclose(mu, mu_ref, atol=1e-5, rtol=1e-5)
    assert jnp.allclose(sigma, s_ref, atol=1e-5, rtol=1e-5)
    assert bool(jnp.all(sigma > 0.0))

    # --- larger ragged batch exercising the multi-step grid + remainder -----
    B2 = 100
    x2 = jax.random.normal(kx2, (B2, IN), dtype=jnp.float32)
    params2, mu2, sigma2 = jax.block_until_ready(
        encoder_forward(x2, w1, b1, w2, b2, tile_b=8))
    p_ref2, mu_ref2, s_ref2 = _reference(x2, w1, b1, w2, b2)
    assert params2.shape == (B2, EMBED_SIZE)
    assert jnp.allclose(params2, p_ref2, atol=1e-5, rtol=1e-5)
    assert jnp.allclose(mu2, mu_ref2, atol=1e-5, rtol=1e-5)
    assert jnp.allclose(sigma2, s_ref2, atol=1e-5, rtol=1e-5)

    print("KERNEL_OK")
</pallas_src>

<mosaic_0001>
module attributes {stable_mosaic.version = 11 : i64} {
  func.func @_encoder_kernel(%arg0: i32, %arg1: memref<8x32xf32, #tpu.memory_space<vmem>>, %arg2: memref<32x16xf32, #tpu.memory_space<vmem>>, %arg3: memref<1x16xf32, #tpu.memory_space<vmem>>, %arg4: memref<16x16xf32, #tpu.memory_space<vmem>>, %arg5: memref<1x16xf32, #tpu.memory_space<vmem>>, %arg6: memref<8x16xf32, #tpu.memory_space<vmem>>) attributes {dimension_semantics = [#tpu.dimension_semantics<parallel>], iteration_bounds = array<i64: 1>, scalar_prefetch = 0 : i64, scratch_operands = 0 : i64, tpu.core_type = #tpu.core_type<tc>, window_params = [{transform_indices = @transform_0, window_bounds = array<i64: 8, 32>}, {pipeline_mode = #tpu.pipeline_mode<synchronous>, transform_indices = @transform_1, window_bounds = array<i64: 32, 16>}, {pipeline_mode = #tpu.pipeline_mode<synchronous>, transform_indices = @transform_2, window_bounds = array<i64: 1, 16>}, {pipeline_mode = #tpu.pipeline_mode<synchronous>, transform_indices = @transform_3, window_bounds = array<i64: 16, 16>}, {pipeline_mode = #tpu.pipeline_mode<synchronous>, transform_indices = @transform_4, window_bounds = array<i64: 1, 16>}, {transform_indices = @transform_5, window_bounds = array<i64: 8, 16>}]} {
    %c0 = arith.constant 0 : index
    %c0_0 = arith.constant 0 : index
    %0 = vector.load %arg1[%c0, %c0_0] : memref<8x32xf32, #tpu.memory_space<vmem>>, vector<8x32xf32>
    %c0_1 = arith.constant 0 : index
    %c0_2 = arith.constant 0 : index
    %1 = vector.load %arg2[%c0_1, %c0_2] : memref<32x16xf32, #tpu.memory_space<vmem>>, vector<32x16xf32>
    %cst = arith.constant dense<0.000000e+00> : vector<8x16xf32>
    %2 = tpu.matmul %0, %1, %cst {dimension_numbers = #tpu.dot_dimension_numbers<[1], [0], [0], [1], [0, 0, 1, 1], [], []>} : vector<8x32xf32>, vector<32x16xf32>, vector<8x16xf32> -> vector<8x16xf32>
    %c0_3 = arith.constant 0 : index
    %c0_4 = arith.constant 0 : index
    %3 = vector.load %arg3[%c0_3, %c0_4] : memref<1x16xf32, #tpu.memory_space<vmem>>, vector<1x16xf32>
    %4 = vector.broadcast %3 : vector<1x16xf32> to vector<8x16xf32>
    %5 = arith.addf %2, %4 : vector<8x16xf32>
    %cst_5 = arith.constant 0.000000e+00 : f32
    %6 = vector.broadcast %cst_5 : f32 to vector<8x16xf32>
    %7 = arith.maximumf %5, %6 : vector<8x16xf32>
    %c0_6 = arith.constant 0 : index
    %c0_7 = arith.constant 0 : index
    %8 = vector.load %arg4[%c0_6, %c0_7] : memref<16x16xf32, #tpu.memory_space<vmem>>, vector<16x16xf32>
    %cst_8 = arith.constant dense<0.000000e+00> : vector<8x16xf32>
    %9 = tpu.matmul %7, %8, %cst_8 {dimension_numbers = #tpu.dot_dimension_numbers<[1], [0], [0], [1], [0, 0, 1, 1], [], []>} : vector<8x16xf32>, vector<16x16xf32>, vector<8x16xf32> -> vector<8x16xf32>
    %c0_9 = arith.constant 0 : index
    %c0_10 = arith.constant 0 : index
    %10 = vector.load %arg5[%c0_9, %c0_10] : memref<1x16xf32, #tpu.memory_space<vmem>>, vector<1x16xf32>
    %11 = vector.broadcast %10 : vector<1x16xf32> to vector<8x16xf32>
    %12 = arith.addf %9, %11 : vector<8x16xf32>
    %13 = tpu.iota {dimensions = array<i32: 1>} : vector<8x16xi32>
    %c8_i32 = arith.constant 8 : i32
    %14 = vector.broadcast %c8_i32 : i32 to vector<8x16xi32>
    %15 = arith.cmpi slt, %13, %14 : vector<8x16xi32>
    %cst_11 = arith.constant 0.000000e+00 : f32
    %16 = vector.broadcast %cst_11 : f32 to vector<8x16xf32>
    %17 = arith.maximumf %12, %16 : vector<8x16xf32>
    %18 = vector.broadcast %cst_11 : f32 to vector<8x16xf32>
    %19 = arith.subf %12, %18 : vector<8x16xf32>
    %20 = arith.cmpf one, %19, %19 : vector<8x16xf32>
    %21 = vector.broadcast %cst_11 : f32 to vector<8x16xf32>
    %22 = arith.addf %12, %21 : vector<8x16xf32>
    %23 = math.absf %19 : vector<8x16xf32>
    %cst_12 = arith.constant 0.000000e+00 : f32
    %24 = vector.broadcast %cst_12 : f32 to vector<8x16xf32>
    %25 = arith.subf %24, %23 : vector<8x16xf32>
    %26 = math.exp %25 : vector<8x16xf32>
    %27 = math.log1p %26 : vector<8x16xf32>
    %28 = arith.addf %17, %27 : vector<8x16xf32>
    %29 = arith.select %20, %22, %28 : vector<8x16xi1>, vector<8x16xf32>
    %cst_13 = arith.constant 1.000000e-07 : f32
    %30 = vector.broadcast %cst_13 : f32 to vector<8x16xf32>
    %31 = arith.addf %29, %30 : vector<8x16xf32>
    %32 = arith.select %15, %12, %31 : vector<8x16xi1>, vector<8x16xf32>
    %c0_14 = arith.constant 0 : index
    %c0_15 = arith.constant 0 : index
    %33 = vector.load %arg6[%c0_14, %c0_15] : memref<8x16xf32, #tpu.memory_space<vmem>>, vector<8x16xf32>
    tpu.vector_store %arg6[%c0_14, %c0_15], %32 {strides = array<i32>} : memref<8x16xf32, #tpu.memory_space<vmem>>, vector<8x16xf32>,
    return
  }
  func.func @transform_0(%arg0: i32) -> (i32, i32) {
    %c0_i32 = arith.constant 0 : i32
    %c0_i32_0 = arith.constant 0 : i32
    return %arg0, %c0_i32 : i32, i32
  }
  func.func @transform_1(%arg0: i32) -> (i32, i32) {
    %c0_i32 = arith.constant 0 : i32
    %c0_i32_0 = arith.constant 0 : i32
    %c0_i32_1 = arith.constant 0 : i32
    return %c0_i32, %c0_i32_0 : i32, i32
  }
  func.func @transform_2(%arg0: i32) -> (i32, i32) {
    %c0_i32 = arith.constant 0 : i32
    %c0_i32_0 = arith.constant 0 : i32
    %c0_i32_1 = arith.constant 0 : i32
    return %c0_i32, %c0_i32_0 : i32, i32
  }
  func.func @transform_3(%arg0: i32) -> (i32, i32) {
    %c0_i32 = arith.constant 0 : i32
    %c0_i32_0 = arith.constant 0 : i32
    %c0_i32_1 = arith.constant 0 : i32
    return %c0_i32, %c0_i32_0 : i32, i32
  }
  func.func @transform_4(%arg0: i32) -> (i32, i32) {
    %c0_i32 = arith.constant 0 : i32
    %c0_i32_0 = arith.constant 0 : i32
    %c0_i32_1 = arith.constant 0 : i32
    return %c0_i32, %c0_i32_0 : i32, i32
  }
  func.func @transform_5(%arg0: i32) -> (i32, i32) {
    %c0_i32 = arith.constant 0 : i32
    %c0_i32_0 = arith.constant 0 : i32
    return %arg0, %c0_i32 : i32, i32
  }
}

</mosaic_0001>

<bundles_post_ra>
// kernel: tpu_custom_call.1
= control target key start
LH: loop header
LB: loop body
LE: loop exit
PB: predicated region body
PF: predicated region fallthrough
CT: control target
= control target key end

     0   :  { %v300_v3 = vmov 0.0|0.0   ;;  %vm301_vm0 = vmmov 0   ;;  %v302_v6 = vmov 0.0   ;;  %s375_s0 = inlined_call_operand.vmem [shape: f32[8,32], index: 0, kind: input, shape index: {}]   ;;  %s376_s1 = inlined_call_operand.vmem [shape: f32[32,16], index: 1, kind: input, shape index: {}]   ;;  %s377_s2 = inlined_call_operand.vmem [shape: f32[1,16], index: 2, kind: input, shape index: {}]   ;;  %s378_s3 = inlined_call_operand.vmem [shape: f32[16,16], index: 3, kind: input, shape index: {}]   ;;  %s379_s4 = inlined_call_operand.vmem [shape: f32[1,16], index: 4, kind: input, shape index: {}]   ;;  %s380_s5 = inlined_call_operand.hbm [shape: f32[8,16], index: 5, kind: output, shape index: {}]  }
   0x1   :  { %v22_v0 = vld [vmem:[%s376_s1] sm:$0xff]  ;;  %v23_v1 = vld [vmem:[%s376_s1 + $0x8] sm:$0xff]  ;;  %v24_v2 = vld [vmem:[%s376_s1 + $0x10] sm:$0xff]  ;;  %259 = vmatprep.subr.bf16.mxu0 %v300_v3  ;;  %249 = vmatprep.mubr.msk.f32.mxu0 %vm301_vm0, %v302_v6 }
   0x2   :  { %v260_v4 = vpack.c.bf16 %v23_v1, %v22_v0  ;;  %v25_v5 = vld [vmem:[%s376_s1 + $0x18] sm:$0xff]  ;;  %265 = vmatprep.subr.bf16.mxu1 %v300_v3  ;;  %256 = vmatprep.mubr.msk.f32.mxu1 %vm301_vm0, %v302_v6 }
   0x3   :  { %10 = vsyncpa [#allocation3], 0  ;;  %v263_v7 = vpack.c.bf16 %v25_v5, %v24_v2  ;;  %v21_v8 = vld [vmem:[%s375_s0] sm:$0xff]  ;;  %vm33_vm1 = vcmask 261120   ;;  %v109_v10 = vld [vmem:[%s378_s3 + $0x8] sm:$0xff]  ;;  %vm117_vm2 = vcmask 130048   ;;  %v191_v28 = vlaneseq }
   0x4   :  { %261 = vmatpush3.bf16.msra.mxu0 %v260_v4  ;;  %v108_v9 = vld [vmem:[%s378_s3] sm:$0xff] }
   0x5   :  { %262 = vmatprep.subr.bf16.mxu0 %v300_v3  ;;  %v266_v11 = vpack.c.bf16 %v109_v10, %v108_v9  ;;  %v229_v12 = vld [vmem:[%s377_s2] ss:$0 sm:$0xff]  ;;  %v192_v34 = vand.u32 127, %v191_v28  ;;  %s303_s2 = smov [#allocation2]  }
   0x6   :  { %v231_v17 = vld [vmem:[%s379_s4] ss:$0 sm:$0xff]  ;;  %s221_s3 = sshll.u32 %s303_s2, 4  ;;  %s222_s3 = int_to_ptr.vmem [resolvable:$true] %s221_s3 }
   0x7   :  { %267 = vmatpush3.bf16.msra.mxu1 %v266_v11  ;;  %vm193_vm5 = vcmp.lt.s32.totalorder %v192_v34, 8  ;;  %s276_s4 = scalar_lea.vmem %s222_s3, 128  ;;  %p281_p1 = scmp.lt.s32.totalorder %s222_s3, %s222_s3 }
   0x8   :  { %264 = vmatpush3.bf16.msra.mxu0 %v263_v7  ;;  %p277_p0 = scmp.ne.s32.totalorder %s222_s3, %s276_s4  ;;  %p282_p2 = scmp.lt.s32.totalorder %s276_s4, %s276_s4 }
   0xa   :  { %p283_p3 = por %p282_p2, %p281_p1 }
   0xb   :  { %250 = vmatmul.mubr.msk.f32.vlgmr.msra.gmra.mrb[0].mxu0 %vm33_vm1, %v21_v8 }
   0xc   :  { %p284_p4 = pnand %p283_p3, %p277_p0 }
  0xde   :  { %v103_v13 = vpop.f32.mrb[0].mxu0 }
  0xdf   :  { %v104_v14 = vadd.f32 %v229_v12, %v103_v13  ;;  %v251_v15 = vpop.f32.mrb[1].mxu0 }
  0xe1   :  { %v107_v16 = vmax.f32 %v104_v14, 0.0 }
  0xe3   :  { %257 = vmatmul.mubr.msk.f32.vlgmr.msra.gmra.mrb[0].mxu1 %vm117_vm2, %v107_v16 }
 0x1b6   :  { %v187_v18 = vpop.f32.mrb[0].mxu1 }
 0x1b7   :  { %v188_v19 = vadd.f32 %v231_v17, %v187_v18  ;;  %v258_v20 = vpop.f32.mrb[1].mxu1 }
 0x1b9   :  { %v197_v21 = vand.u32 2147483647, %v188_v19  ;;  %v194_v33 = vmax.f32 %v188_v19, 0.0  ;;  %vm195_vm4 = vcmp.ne.f32.partialorder %v188_v19, %v188_v19 }
 0x1bb   :  { %v198_v22 = vsub.f32 0.0, %v197_v21 }
 0x1bd   :  { %v199_v23 = vmul.f32 1.442695, %v198_v22 }
 0x1bf   :  { %272 = vpow2.f32 %v199_v23 }
 0x1c9   :  { %v273_v24 = vpop.eup %272 }
 0x1ca   :  { %v201_v25 = vadd.f32 1.0, %v273_v24  ;;  %v204_v26 = vmul.f32 -0.5, %v273_v24  ;;  %v207_v29 = vand.u32 2147483647, %v273_v24 }
 0x1cc   :  { %274 = vlog2.f32 %v201_v25  ;;  %v205_v27 = vadd.f32 1.0, %v204_v26  ;;  %vm208_vm3 = vcmp.lt.f32.partialorder %v207_v29, 0.0004427343 }
 0x1ce   :  { %v206_v32 = vmul.f32 %v273_v24, %v205_v27 }
 0x1d6   :  { %v275_v30 = vpop.eup %274 }
 0x1d7   :  { %v203_v31 = vmul.f32 0.6931472, %v275_v30 }
 0x1d9   :  { %v209_v35 = vsel %vm208_vm3, %v206_v32, %v203_v31 }
 0x1da   :  { %v210_v36 = vadd.f32 %v209_v35, %v194_v33 }
 0x1dc   :  { %v211_v37 = vsel %vm195_vm4, %v188_v19, %v210_v36 }
 0x1dd   :  { %v212_v38 = vadd.f32 1e-07, %v211_v37 }
 0x1df   :  { %v213_v39 = vsel %vm193_vm5, %v188_v19, %v212_v38 }
 0x1e0   :  { %214 = vst.msk [vmem:[#allocation2] sm:$0xff] %vm117_vm2, %v213_v39 }
 0x1e1   :  { %287 = shalt.err (!%p284_p4)
}
 0x1e2   :  { %s288_s11 = scalar_lea.hbm %s380_s5, 128 }
 0x1e3   :  { %p289_p5 = scmp.ne.s32.totalorder %s380_s5, %s288_s11  ;;  %p292_p6 = scmp.lt.u32.totalorder %s288_s11, %s380_s5 }
 0x1e5   :  { %p294_p7 = pnand %p292_p6, %p289_p5 }
 0x1e7   :  { %297 = shalt.err (!%p294_p7)
}
 0x1e8   :  { %224 = dma.vmem_to_hbm [thread:$0]  %s222_s3, 128, %s380_s5, [#allocation3]  }
 0x1e9   :  { %298 = dma.done.wait [#allocation3], 128  }
 0x1ea   :  { %299 = vsyncadd [#allocation3], 4294967168 }
 0x1eb   :  { %228 = vsyncpa [#allocation3], 1 }

</bundles_post_ra>
